<compile_context>
chip_gen: v5e
topology: v5e:2x2
jax: 0.10.0
libtpu: 0.0.40
codegen_flags: <defaults>
</compile_context>

<pallas_src>
import jax
import jax.numpy as jnp
from jax.experimental import pallas as pl
from jax.experimental.pallas import tpu as pltpu


def _add_pos_emb_kernel(x_ref, pe_ref, o_ref):
    # x_ref: (tB, tC), pe_ref: (1, tC) -> broadcast add over the row (batch) dim.
    o_ref[...] = (x_ref[...] + pe_ref[...]).astype(o_ref.dtype)


def _sublane_multiple(dtype) -> int:
    # Sub-32-bit dtypes pack along sublanes: need 16 (bf16) / 32 (int8) rows.
    return max(8, 32 // jnp.dtype(dtype).itemsize)


def add_position_embs(x, pos_embedding, *, block_bytes=2 * 1024 * 1024,
                      donate_x=False):
    """AddPositionEmbs forward: x (B, S, E) + pos_embedding (1, S, E)."""
    assert x.ndim == 3, (
        "Input dimensions to PosEmb should be (batch, seq, emb), got %d" % x.ndim)
    B, S, E = x.shape
    assert pos_embedding.shape == (1, S, E)

    out_dtype = jnp.result_type(x.dtype, pos_embedding.dtype)
    SE = S * E

    # Lane-dense 2-D views (free metadata reshape outside the kernel).
    x2 = x.reshape(B, SE)
    pe2 = pos_embedding.reshape(1, SE)

    itemsize = max(jnp.dtype(x.dtype).itemsize,
                   jnp.dtype(pos_embedding.dtype).itemsize,
                   jnp.dtype(out_dtype).itemsize)

    # Row (batch) tile: multiple of the sublane granularity, or the full dim.
    sub = _sublane_multiple(x.dtype)
    if B <= sub:
        tB = B
    else:
        tB = min((B // sub) * sub, 64)

    # Column tile: multiple of 128 lanes, sized against the per-block budget,
    # or the full flattened width when that already fits.
    budget_cols = max(128, (block_bytes // (tB * itemsize)) // 128 * 128)
    tC = SE if SE <= budget_cols else budget_cols

    n_col = pl.cdiv(SE, tC)
    n_row = pl.cdiv(B, tB)

    kwargs = {}
    if donate_x and out_dtype == x.dtype:
        # Reuse x's HBM buffer for the output (only valid if x is dead after).
        kwargs["input_output_aliases"] = {0: 0}

    out2 = pl.pallas_call(
        _add_pos_emb_kernel,
        out_shape=jax.ShapeDtypeStruct((B, SE), out_dtype),
        grid_spec=pltpu.PrefetchScalarGridSpec(
            num_scalar_prefetch=0,
            # Column tiles outer, batch-row tiles inner: pe's block index is
            # constant over the inner sweep, so it is only re-fetched when the
            # column tile changes.
            grid=(n_col, n_row),
            in_specs=[
                pl.BlockSpec((tB, tC), lambda c, b: (b, c)),   # x rows
                pl.BlockSpec((1, tC), lambda c, b: (0, c)),    # shared pos emb
            ],
            out_specs=pl.BlockSpec((tB, tC), lambda c, b: (b, c)),
        ),
        compiler_params=pltpu.CompilerParams(
            dimension_semantics=("parallel", "parallel"),
            vmem_limit_bytes=32 * 1024 * 1024,
        ),
        **kwargs,
    )(x2, pe2)

    return out2.reshape(B, S, E)


def init_pos_embedding(key, seq, emb, dtype=jnp.float32, stddev=0.02):
    # Stand-in for posemb_init (host-side parameter init, not a kernel concern).
    return (jax.random.normal(key, (1, seq, emb)) * stddev).astype(dtype)


def _check(B, S, E, key, dtype=jnp.float32, **kw):
    kx, kp = jax.random.split(key)
    x = jax.random.normal(kx, (B, S, E)).astype(dtype)
    pe = init_pos_embedding(kp, S, E, dtype=dtype)
    out = jax.block_until_ready(add_position_embs(x, pe, **kw))
    ref = x + pe
    assert out.shape == (B, S, E)
    assert out.dtype == ref.dtype
    assert jnp.allclose(out, ref, atol=1e-6), (
        "mismatch vs reference for shape (%d, %d, %d)" % (B, S, E))


if __name__ == "__main__":
    key = jax.random.PRNGKey(0)
    k1, k2, k3 = jax.random.split(key, 3)

    # Module-spec demo shape: (batch=2, seq=8, emb=32) -> flattened lane dim 256.
    _check(2, 8, 32, k1)
    # Multi-tile path: tiny block budget forces several 128-wide column tiles.
    _check(4, 16, 128, k2, block_bytes=4096)
    # Non-128-divisible flattened width + partial (masked) last column tile.
    _check(3, 12, 40, k3, block_bytes=2048)

    print("KERNEL_OK")
</pallas_src>

<mosaic_0001>
module attributes {stable_mosaic.version = 11 : i64} {
  func.func @_add_pos_emb_kernel(%arg0: i32, %arg1: i32, %arg2: memref<2x256xf32, #tpu.memory_space<vmem>>, %arg3: memref<1x256xf32, #tpu.memory_space<vmem>>, %arg4: memref<2x256xf32, #tpu.memory_space<vmem>>) attributes {dimension_semantics = [#tpu.dimension_semantics<parallel>, #tpu.dimension_semantics<parallel>], iteration_bounds = array<i64: 1, 1>, scalar_prefetch = 0 : i64, scratch_operands = 0 : i64, tpu.core_type = #tpu.core_type<tc>, window_params = [{transform_indices = @transform_0, window_bounds = array<i64: 2, 256>}, {transform_indices = @transform_1, window_bounds = array<i64: 1, 256>}, {transform_indices = @transform_2, window_bounds = array<i64: 2, 256>}]} {
    %c0 = arith.constant 0 : index
    %c0_0 = arith.constant 0 : index
    %0 = vector.load %arg2[%c0, %c0_0] : memref<2x256xf32, #tpu.memory_space<vmem>>, vector<2x256xf32>
    %c0_1 = arith.constant 0 : index
    %c0_2 = arith.constant 0 : index
    %1 = vector.load %arg3[%c0_1, %c0_2] : memref<1x256xf32, #tpu.memory_space<vmem>>, vector<1x256xf32>
    %2 = vector.broadcast %1 : vector<1x256xf32> to vector<2x256xf32>
    %3 = arith.addf %0, %2 : vector<2x256xf32>
    %c0_3 = arith.constant 0 : index
    %c0_4 = arith.constant 0 : index
    %4 = vector.load %arg4[%c0_3, %c0_4] : memref<2x256xf32, #tpu.memory_space<vmem>>, vector<2x256xf32>
    tpu.vector_store %arg4[%c0_3, %c0_4], %3 {strides = array<i32>} : memref<2x256xf32, #tpu.memory_space<vmem>>, vector<2x256xf32>,
    return
  }
  func.func @transform_0(%arg0: i32, %arg1: i32) -> (i32, i32) {
    %c0_i32 = arith.constant 0 : i32
    return %arg1, %arg0 : i32, i32
  }
  func.func @transform_1(%arg0: i32, %arg1: i32) -> (i32, i32) {
    %c0_i32 = arith.constant 0 : i32
    %c0_i32_0 = arith.constant 0 : i32
    return %c0_i32, %arg0 : i32, i32
  }
  func.func @transform_2(%arg0: i32, %arg1: i32) -> (i32, i32) {
    %c0_i32 = arith.constant 0 : i32
    return %arg1, %arg0 : i32, i32
  }
}

</mosaic_0001>

<bundles_post_ra>
// kernel: tpu_custom_call.1
= control target key start
LH: loop header
LB: loop body
LE: loop exit
PB: predicated region body
PF: predicated region fallthrough
CT: control target
= control target key end

     0   :  { %7 = vsyncpa [#allocation3], 0  ;;  %s177_s0 = inlined_call_operand.hbm [shape: f32[2,256], index: 0, kind: input, shape index: {}]   ;;  %s178_s1 = inlined_call_operand.hbm [shape: f32[1,256], index: 1, kind: input, shape index: {}]   ;;  %s179_s2 = inlined_call_operand.hbm [shape: f32[2,256], index: 2, kind: output, shape index: {}]  }
   0x1   :  { %8 = vsyncpa [#allocation6], 0 }
   0x2   :  { %9 = vsyncpa [#allocation4], 0  ;;  %s15_s11 = sshll.u32 %s177_s0, 4  ;;  %s150_s12 = smov [#allocation2]   ;;  %s16_s11 = int_to_ptr.hbm [resolvable:$true] %s15_s11 }
   0x3   :  { %s17_s13 = sshll.u32 %s150_s12, 4  ;;  %s26_s16 = sshll.u32 %s178_s1, 4  ;;  %s18_s13 = int_to_ptr.vmem [resolvable:$true] %s17_s13  ;;  %s27_s16 = int_to_ptr.hbm [resolvable:$true] %s26_s16 }
   0x4   :  { %20 = dma.hbm_to_vmem [thread:$0]  %s16_s11, 64, %s18_s13, [#allocation3]  }
   0x5   :  { %s151_s17 = smov [#allocation5]  }
   0x6   :  { %s28_s18 = sshll.u32 %s151_s17, 4  ;;  %s29_s18 = int_to_ptr.vmem [resolvable:$true] %s28_s18 }
   0x7   :  { %31 = dma.hbm_to_vmem [thread:$0]  %s27_s16, 32, %s29_s18, [#allocation6]  }
   0x8   :  { %144 = dma.done.wait [#allocation3], 64  }
   0x9   :  { %145 = vsyncadd [#allocation3], 4294967232 }
   0xa   :  { %146 = dma.done.wait [#allocation6], 32  }
   0xb   :  { %147 = vsyncadd [#allocation6], 4294967264  ;;  %v41_v0 = vld [vmem:[#allocation5] sm:$0x3]  ;;  %vm46_vm0 = vcmask 1041408   ;;  %s152_s0 = smov [#allocation7]  }
   0xc   :  { %v43_v1 = vperm.slane %v41_v0, 0  ;;  %v44_v2 = vperm.slane %v41_v0, 1  ;;  %v40_v3 = vld [vmem:[#allocation2] sm:$0xf]  ;;  %s56_s19 = sshll.u32 %s152_s0, 4  ;;  %s58_s21 = sshll.u32 %s179_s2, 4  ;;  %s57_s19 = int_to_ptr.vmem [resolvable:$true] %s56_s19  ;;  %s59_s21 = int_to_ptr.hbm [resolvable:$true] %s58_s21 }
   0xe   :  { %v45_v4 = vrot.slane %v44_v2, 6 }
  0x10   :  { %v47_v5 = vsel %vm46_vm0, %v43_v1, %v45_v4 }
  0x11   :  { %v49_v6 = vadd.f32 %v47_v5, %v40_v3 }
  0x13   :  { %50 = vst [vmem:[#allocation7] sm:$0xf] %v49_v6 }
  0x14   :  { %61 = dma.vmem_to_hbm [thread:$0]  %s57_s19, 64, %s59_s21, [#allocation4]  }
  0x15   :  { %148 = dma.done.wait [#allocation4], 64  }
  0x16   :  { %149 = vsyncadd [#allocation4], 4294967232 }
  0x17   :  { %66 = vsyncpa [#allocation3], 1 }
  0x18   :  { %67 = vsyncpa [#allocation6], 1 }
  0x19   :  { %68 = vsyncpa [#allocation4], 1 }

</bundles_post_ra>
